<compile_context>
chip_gen: v6e
topology: v6e:2x2x1
jax: 0.10.0
libtpu: 0.0.40
codegen_flags: <defaults>
</compile_context>

<pallas_src>
import jax
import jax.numpy as jnp
from jax.experimental import pallas as pl
from jax.experimental.pallas import tpu as pltpu


def cnp_mlp2_kernel(yT_ref, w1yT_ref, b1T_ref, w2T_ref, b2T_ref,
                    w3T_ref, b3T_ref, oT_ref):
    # Layer 1 (transposed): h1^T = W1y^T @ Y^T + b1_eff^T, shape (H1, TILE_N).
    if yT_ref.shape[0] == 1:
        # F == 1: outer product via VPU broadcast multiply (no K=1 MXU matmul).
        h = w1yT_ref[...] * yT_ref[...] + b1T_ref[...]
    else:
        # TODO(synk): general-F fallback kept in f32 (unused for this model).
        h = (jnp.dot(w1yT_ref[...], yT_ref[...],
                     preferred_element_type=jnp.float32) + b1T_ref[...])
    h = jnp.maximum(h, 0.0)

    # Layer 2: h2^T = W2^T @ h1^T + b2^T   (H1, TILE_N).
    # Matmul operands in the (possibly bf16) weight dtype, f32 accumulate;
    # bias add + ReLU stay f32.
    h = (jnp.dot(w2T_ref[...], h.astype(w2T_ref.dtype),
                 preferred_element_type=jnp.float32) + b2T_ref[...])
    h = jnp.maximum(h, 0.0)

    # Output layer (logits, no activation): o^T = W3^T @ h2^T + b3^T  (C, TILE_N).
    oT_ref[...] = (jnp.dot(w3T_ref[...], h.astype(w3T_ref.dtype),
                           preferred_element_type=jnp.float32) + b3T_ref[...])


def _choose_tile_n(n, tile_n_max):
    """Lane-multiple tile, capped for VMEM, >= 2 grid steps when possible."""
    half = -(-n // 2)                         # ceil(n / 2)
    tile = ((half + 127) // 128) * 128        # round up to a lane multiple
    return max(128, min(tile_n_max, tile))


def cnp_forward(Y, r, params, *, tile_n=None, tile_n_max=32 * 1024,
                matmul_dtype=jnp.bfloat16):
    """Pallas implementation of CNP.forward(Y, r) -> (N, n_classes) logits.

    tile_n_max=32K keeps the (32, tile_n) f32 intermediates well inside v7x's
    64 MiB VMEM while being large enough to amortize per-grid-step overhead on
    all generations; v5e/v6e (128 MiB VMEM) can pass a larger tile_n_max.
    """
    W1, b1, W2, b2, W3, b3 = params
    N, F = Y.shape
    H1 = W1.shape[1]
    C = W3.shape[1]

    if tile_n is None:
        tile_n = _choose_tile_n(N, tile_n_max)

    # Fold the loop-invariant context term into the layer-1 bias (plain JAX).
    b1_eff = r.reshape(1, -1) @ W1[F:, :] + b1            # (1, H1)

    # Transposed, lane-dense layout: N on the lane axis. No padding — Pallas
    # masks the partial last block (see INVARIANT in the header comment).
    yT = Y.T                                              # (F, N)
    w1yT = W1[:F, :].T                                    # (H1, F)  f32
    b1T = b1_eff.T                                        # (H1, 1)  f32
    w2T = W2.T.astype(matmul_dtype)                       # (H1, H1)
    b2T = b2.T                                            # (H1, 1)  f32
    w3T = W3.T.astype(matmul_dtype)                       # (C, H1)
    b3T = b3.T                                            # (C, 1)   f32

    weight_bytes = sum(int(a.size) * a.dtype.itemsize
                       for a in (w1yT, b1T, w2T, b2T, w3T, b3T))
    cost = pl.CostEstimate(
        flops=2 * N * (F * H1 + H1 * H1 + H1 * C),
        transcendentals=0,
        bytes_accessed=N * (F + C) * 4 + weight_bytes,
    )

    const = lambda i: (0, 0)                              # weights stay resident
    oT = pl.pallas_call(
        cnp_mlp2_kernel,
        out_shape=jax.ShapeDtypeStruct((C, N), jnp.float32),
        grid_spec=pltpu.PrefetchScalarGridSpec(
            num_scalar_prefetch=0,
            grid=(pl.cdiv(N, tile_n),),
            in_specs=[
                pl.BlockSpec((F, tile_n), lambda i: (0, i)),   # Y^T tile
                pl.BlockSpec(w1yT.shape, const),
                pl.BlockSpec(b1T.shape, const),
                pl.BlockSpec(w2T.shape, const),
                pl.BlockSpec(b2T.shape, const),
                pl.BlockSpec(w3T.shape, const),
                pl.BlockSpec(b3T.shape, const),
            ],
            out_specs=pl.BlockSpec((C, tile_n), lambda i: (0, i)),
        ),
        compiler_params=pltpu.CompilerParams(
            dimension_semantics=("parallel",),
            vmem_limit_bytes=48 * 1024 * 1024,   # safe on v7x (64 MiB physical)
        ),
        cost_estimate=cost,
    )(yT, w1yT, b1T, w2T, b2T, w3T, b3T)

    # Back to the PyTorch (N, n_classes) layout. If the consumer can take the
    # (n_classes, N) slab directly, dropping this .T saves one HBM pass.
    return oT.T


def init_params(key, n_features=1, dims=(32, 32), n_classes=2):
    """Deterministic init of mlp2 params: dims [F + n_classes*dims[-1], 32, 32, n_classes]."""
    layer_dims = [n_features + n_classes * dims[-1]] + list(dims) + [n_classes]
    params = []
    for i in range(len(layer_dims) - 1):
        key, kw, kb = jax.random.split(key, 3)
        fan_in, fan_out = layer_dims[i], layer_dims[i + 1]
        scale = 1.0 / jnp.sqrt(jnp.float32(fan_in))
        W = jax.random.uniform(kw, (fan_in, fan_out), jnp.float32, -scale, scale)
        b = jax.random.uniform(kb, (1, fan_out), jnp.float32, -scale, scale)
        params += [W, b]
    return tuple(params)


def cnp_forward_ref(Y, r, params):
    """Plain-JAX reference mirroring the PyTorch forward literally."""
    W1, b1, W2, b2, W3, b3 = params
    r_rep = jnp.tile(r.reshape(1, -1), (Y.shape[0], 1))
    x = jnp.concatenate([Y, r_rep], axis=1)
    h = jnp.maximum(x @ W1 + b1, 0.0)
    h = jnp.maximum(h @ W2 + b2, 0.0)
    return h @ W3 + b3


if __name__ == "__main__":
    n_features = 1
    dims = (32, 32)
    n_classes = 2

    key = jax.random.PRNGKey(0)
    kp, ky, kr = jax.random.split(key, 3)

    params = init_params(kp, n_features, dims, n_classes)
    r = jax.random.normal(kr, (n_classes * dims[-1],), jnp.float32)  # (64,)

    # Small test (single partial block), exact f32 matmul path, tight tolerance.
    N = 8
    Y = jax.random.normal(ky, (N, n_features), jnp.float32)
    out = jax.block_until_ready(cnp_forward(Y, r, params, matmul_dtype=jnp.float32))
    ref = cnp_forward_ref(Y, r, params)
    assert out.shape == (N, n_classes)
    assert jnp.allclose(out, ref, atol=1e-4, rtol=1e-5)

    # Multi-block test exercising the grid + masked partial last block, with
    # the default bf16-operand / f32-accumulate matmuls (looser tolerance).
    N2 = 1000
    Y2 = jax.random.normal(jax.random.PRNGKey(1), (N2, n_features), jnp.float32)
    out2 = jax.block_until_ready(cnp_forward(Y2, r, params))
    ref2 = cnp_forward_ref(Y2, r, params)
    assert out2.shape == (N2, n_classes)
    assert jnp.allclose(out2, ref2, atol=3e-2, rtol=3e-2)

    print("KERNEL_OK")
</pallas_src>

<mosaic_0001>
module attributes {stable_mosaic.version = 11 : i64} {
  func.func @cnp_mlp2_kernel(%arg0: i32, %arg1: memref<1x128xf32, #tpu.memory_space<vmem>>, %arg2: memref<32x1xf32, #tpu.memory_space<vmem>>, %arg3: memref<32x1xf32, #tpu.memory_space<vmem>>, %arg4: memref<32x32xf32, #tpu.memory_space<vmem>>, %arg5: memref<32x1xf32, #tpu.memory_space<vmem>>, %arg6: memref<2x32xf32, #tpu.memory_space<vmem>>, %arg7: memref<2x1xf32, #tpu.memory_space<vmem>>, %arg8: memref<2x128xf32, #tpu.memory_space<vmem>>) attributes {dimension_semantics = [#tpu.dimension_semantics<parallel>], iteration_bounds = array<i64: 1>, scalar_prefetch = 0 : i64, scratch_operands = 0 : i64, tpu.core_type = #tpu.core_type<tc>, window_params = [{transform_indices = @transform_0, window_bounds = array<i64: 1, 128>}, {pipeline_mode = #tpu.pipeline_mode<synchronous>, transform_indices = @transform_1, window_bounds = array<i64: 32, 1>}, {pipeline_mode = #tpu.pipeline_mode<synchronous>, transform_indices = @transform_2, window_bounds = array<i64: 32, 1>}, {pipeline_mode = #tpu.pipeline_mode<synchronous>, transform_indices = @transform_3, window_bounds = array<i64: 32, 32>}, {pipeline_mode = #tpu.pipeline_mode<synchronous>, transform_indices = @transform_4, window_bounds = array<i64: 32, 1>}, {pipeline_mode = #tpu.pipeline_mode<synchronous>, transform_indices = @transform_5, window_bounds = array<i64: 2, 32>}, {pipeline_mode = #tpu.pipeline_mode<synchronous>, transform_indices = @transform_6, window_bounds = array<i64: 2, 1>}, {transform_indices = @transform_7, window_bounds = array<i64: 2, 128>}]} {
    %c0 = arith.constant 0 : index
    %c0_0 = arith.constant 0 : index
    %0 = vector.load %arg2[%c0, %c0_0] : memref<32x1xf32, #tpu.memory_space<vmem>>, vector<32x1xf32>
    %c0_1 = arith.constant 0 : index
    %c0_2 = arith.constant 0 : index
    %1 = vector.load %arg1[%c0_1, %c0_2] : memref<1x128xf32, #tpu.memory_space<vmem>>, vector<1x128xf32>
    %2 = vector.broadcast %0 : vector<32x1xf32> to vector<32x128xf32>
    %3 = vector.broadcast %1 : vector<1x128xf32> to vector<32x128xf32>
    %4 = arith.mulf %2, %3 : vector<32x128xf32>
    %c0_3 = arith.constant 0 : index
    %c0_4 = arith.constant 0 : index
    %5 = vector.load %arg3[%c0_3, %c0_4] : memref<32x1xf32, #tpu.memory_space<vmem>>, vector<32x1xf32>
    %6 = vector.broadcast %5 : vector<32x1xf32> to vector<32x128xf32>
    %7 = arith.addf %4, %6 : vector<32x128xf32>
    %cst = arith.constant 0.000000e+00 : f32
    %8 = vector.broadcast %cst : f32 to vector<32x128xf32>
    %9 = arith.maximumf %7, %8 : vector<32x128xf32>
    %c0_5 = arith.constant 0 : index
    %c0_6 = arith.constant 0 : index
    %10 = vector.load %arg4[%c0_5, %c0_6] : memref<32x32xf32, #tpu.memory_space<vmem>>, vector<32x32xf32>
    %cst_7 = arith.constant dense<0.000000e+00> : vector<32x128xf32>
    %11 = tpu.matmul %10, %9, %cst_7 {dimension_numbers = #tpu.dot_dimension_numbers<[1], [0], [0], [1], [0, 0, 1, 1], [], []>} : vector<32x32xf32>, vector<32x128xf32>, vector<32x128xf32> -> vector<32x128xf32>
    %c0_8 = arith.constant 0 : index
    %c0_9 = arith.constant 0 : index
    %12 = vector.load %arg5[%c0_8, %c0_9] : memref<32x1xf32, #tpu.memory_space<vmem>>, vector<32x1xf32>
    %13 = vector.broadcast %12 : vector<32x1xf32> to vector<32x128xf32>
    %14 = arith.addf %11, %13 : vector<32x128xf32>
    %cst_10 = arith.constant 0.000000e+00 : f32
    %15 = vector.broadcast %cst_10 : f32 to vector<32x128xf32>
    %16 = arith.maximumf %14, %15 : vector<32x128xf32>
    %c0_11 = arith.constant 0 : index
    %c0_12 = arith.constant 0 : index
    %17 = vector.load %arg6[%c0_11, %c0_12] : memref<2x32xf32, #tpu.memory_space<vmem>>, vector<2x32xf32>
    %cst_13 = arith.constant dense<0.000000e+00> : vector<2x128xf32>
    %18 = tpu.matmul %17, %16, %cst_13 {dimension_numbers = #tpu.dot_dimension_numbers<[1], [0], [0], [1], [0, 0, 1, 1], [], []>} : vector<2x32xf32>, vector<32x128xf32>, vector<2x128xf32> -> vector<2x128xf32>
    %c0_14 = arith.constant 0 : index
    %c0_15 = arith.constant 0 : index
    %19 = vector.load %arg7[%c0_14, %c0_15] : memref<2x1xf32, #tpu.memory_space<vmem>>, vector<2x1xf32>
    %20 = vector.broadcast %19 : vector<2x1xf32> to vector<2x128xf32>
    %21 = arith.addf %18, %20 : vector<2x128xf32>
    %c0_16 = arith.constant 0 : index
    %c0_17 = arith.constant 0 : index
    %22 = vector.load %arg8[%c0_16, %c0_17] : memref<2x128xf32, #tpu.memory_space<vmem>>, vector<2x128xf32>
    tpu.vector_store %arg8[%c0_16, %c0_17], %21 {strides = array<i32>} : memref<2x128xf32, #tpu.memory_space<vmem>>, vector<2x128xf32>,
    return
  }
  func.func @transform_0(%arg0: i32) -> (i32, i32) {
    %c0_i32 = arith.constant 0 : i32
    %c0_i32_0 = arith.constant 0 : i32
    return %c0_i32, %arg0 : i32, i32
  }
  func.func @transform_1(%arg0: i32) -> (i32, i32) {
    %c0_i32 = arith.constant 0 : i32
    %c0_i32_0 = arith.constant 0 : i32
    %c0_i32_1 = arith.constant 0 : i32
    return %c0_i32, %c0_i32_0 : i32, i32
  }
  func.func @transform_2(%arg0: i32) -> (i32, i32) {
    %c0_i32 = arith.constant 0 : i32
    %c0_i32_0 = arith.constant 0 : i32
    %c0_i32_1 = arith.constant 0 : i32
    return %c0_i32, %c0_i32_0 : i32, i32
  }
  func.func @transform_3(%arg0: i32) -> (i32, i32) {
    %c0_i32 = arith.constant 0 : i32
    %c0_i32_0 = arith.constant 0 : i32
    %c0_i32_1 = arith.constant 0 : i32
    return %c0_i32, %c0_i32_0 : i32, i32
  }
  func.func @transform_4(%arg0: i32) -> (i32, i32) {
    %c0_i32 = arith.constant 0 : i32
    %c0_i32_0 = arith.constant 0 : i32
    %c0_i32_1 = arith.constant 0 : i32
    return %c0_i32, %c0_i32_0 : i32, i32
  }
  func.func @transform_5(%arg0: i32) -> (i32, i32) {
    %c0_i32 = arith.constant 0 : i32
    %c0_i32_0 = arith.constant 0 : i32
    %c0_i32_1 = arith.constant 0 : i32
    return %c0_i32, %c0_i32_0 : i32, i32
  }
  func.func @transform_6(%arg0: i32) -> (i32, i32) {
    %c0_i32 = arith.constant 0 : i32
    %c0_i32_0 = arith.constant 0 : i32
    %c0_i32_1 = arith.constant 0 : i32
    return %c0_i32, %c0_i32_0 : i32, i32
  }
  func.func @transform_7(%arg0: i32) -> (i32, i32) {
    %c0_i32 = arith.constant 0 : i32
    %c0_i32_0 = arith.constant 0 : i32
    return %c0_i32, %arg0 : i32, i32
  }
}

</mosaic_0001>

<bundles_post_ra>
// kernel: tpu_custom_call.1
= control target key start
LH: loop header
LB: loop body
LE: loop exit
PB: predicated region body
PF: predicated region fallthrough
CT: control target
= control target key end

     0   :  { %v391_v2 = vmov 0   ;;  %s500_s0 = inlined_call_operand.vmem [shape: f32[1,8], index: 0, kind: input, shape index: {}]   ;;  %s501_s1 = inlined_call_operand.vmem [shape: f32[32,1], index: 1, kind: input, shape index: {}]   ;;  %s502_s2 = inlined_call_operand.vmem [shape: f32[32,1], index: 2, kind: input, shape index: {}]   ;;  %s503_s3 = inlined_call_operand.vmem [shape: f32[32,32], index: 3, kind: input, shape index: {}]   ;;  %s504_s4 = inlined_call_operand.vmem [shape: f32[32,1], index: 4, kind: input, shape index: {}]   ;;  %s505_s5 = inlined_call_operand.vmem [shape: f32[2,32], index: 5, kind: input, shape index: {}]   ;;  %s506_s6 = inlined_call_operand.vmem [shape: f32[2,1], index: 6, kind: input, shape index: {}]   ;;  %s507_s7 = inlined_call_operand.hbm [shape: f32[2,8], index: 7, kind: output, shape index: {}]  }
   0x1   :  { %v65_v0 = vld [vmem:[%s502_s2 + $0x18] sm:$0xff]  ;;  %368 = vset.pattern.permute.xlu1 %v391_v2  ;;  %367 = vset.pattern.permute.xlu0 %v391_v2  ;;  %v29_v3 = vld [vmem:[%s501_s1 + $0x10] sm:$0xff]  ;;  %v28_v4 = vld [vmem:[%s501_s1 + $0x8] sm:$0xff] }
   0x2   :  { %v30_v1 = vld [vmem:[%s501_s1 + $0x18] sm:$0xff]  ;;  %83 = vperm.xlu1 %368, %v65_v0  }
   0x3   :  { %49 = vperm.xlu0 %367, %v30_v1  }
   0x4   :  { %12 = vsyncpa [#allocation3], 0  ;;  %v64_v5 = vld [vmem:[%s502_s2 + $0x10] sm:$0xff]  ;;  %v27_v6 = vld [vmem:[%s501_s1] sm:$0xff]  ;;  %vm122_vm0 = vcmask 261120   ;;  %v392_v39 = vmov 0.0  }
   0x5   :  { %v63_v7 = vld [vmem:[%s502_s2 + $0x8] sm:$0xff]  ;;  %v62_v8 = vld [vmem:[%s502_s2] sm:$0xff]  ;;  %v101_v9 = vld [vmem:[%s504_s4 + $0x18] sm:$0xff]  ;;  %352 = vmatprep.subr.mxu1 %v392_v39  ;;  %vm393_vm1 = vmmov 0   ;;  %s394_s10 = smov [#allocation2]  }
   0x6   :  { %39 = vperm.xlu1 %368, %v28_v4   ;;  %v100_v10 = vld [vmem:[%s504_s4 + $0x10] sm:$0xff]  ;;  %v94_v11 = vld [vmem:[%s503_s3] sm:$0xff]  ;;  %v99_v12 = vld [vmem:[%s504_s4 + $0x8] sm:$0xff]  ;;  %360 = vmatprep.mubr.msk.f32.mxu1 %vm393_vm1, %v392_v39  ;;  %s311_s11 = sshll.u32 %s394_s10, 4  ;;  %s312_s11 = int_to_ptr.vmem [resolvable:$true] %s311_s11 }
   0x7   :  { %44 = vperm.xlu0 %367, %v29_v3   ;;  %346 = vmatprep.mubr.msk.f32.mxu0 %vm122_vm0, %v94_v11  ;;  %v98_v13 = vld [vmem:[%s504_s4] sm:$0xff]  ;;  %v95_v36 = vld [vmem:[%s503_s3 + $0x8] sm:$0xff]  ;;  %v96_v37 = vld [vmem:[%s503_s3 + $0x10] sm:$0xff]  ;;  %s369_s12 = scalar_lea.vmem %s312_s11, 32  ;;  %p374_p1 = scmp.lt.s32.totalorder %s312_s11, %s312_s11 }
   0x8   :  { %v225_v14 = vld [vmem:[%s506_s6] sm:$0x3]  ;;  %v97_v38 = vld [vmem:[%s503_s3 + $0x18] sm:$0xff]  ;;  %p370_p0 = scmp.ne.s32.totalorder %s312_s11, %s369_s12  ;;  %p375_p2 = scmp.lt.s32.totalorder %s369_s12, %s369_s12 }
   0x9   :  { %v319_v15 = vld [vmem:[%s500_s0] ss:$0 sm:$0xff] }
   0xa   :  { %34 = vperm.xlu1 %368, %v27_v6   ;;  %v224_v56 = vld [vmem:[%s505_s5] sm:$0x3]  ;;  %p376_p3 = por %p375_p2, %p374_p1 }
   0xb   :  { %78 = vperm.xlu0 %367, %v64_v5  }
   0xc   :  { %p377_p4 = pnand %p376_p3, %p370_p0 }
   0xe   :  { %68 = vperm.xlu1 %368, %v62_v8  }
   0xf   :  { %73 = vperm.xlu0 %367, %v63_v7  }
  0x12   :  { %114 = vperm.xlu1 %368, %v100_v10  }
  0x13   :  { %119 = vperm.xlu0 %367, %v101_v9  }
  0x16   :  { %104 = vperm.xlu1 %368, %v98_v13  }
  0x17   :  { %109 = vperm.xlu0 %367, %v99_v12  }
  0x1b   :  { %228 = vperm.xlu0 %367, %v225_v14  }
  0x7d   :  { %v84_v16 = vpop.permute.xlu1 %83 }
  0x7e   :  { %v50_v17 = vpop.permute.xlu0 %49 }
  0x7f   :  { %v61_v18 = vmul.f32 %v319_v15, %v50_v17 }
  0x81   :  { %v89_v19 = vadd.f32 %v84_v16, %v61_v18  ;;  %v40_v21 = vpop.permute.xlu1 %39 }
  0x82   :  { %v45_v20 = vpop.permute.xlu0 %44  ;;  %v59_v27 = vmul.f32 %v319_v15, %v40_v21 }
  0x83   :  { %v93_v22 = vmax.f32 %v89_v19, 0.0  ;;  %v60_v23 = vmul.f32 %v319_v15, %v45_v20 }
  0x85   :  { %338 = vmatprep.subr.mxu0 %v93_v22  ;;  %v35_v25 = vpop.permute.xlu1 %34 }
  0x86   :  { %339 = vmatpush3.msra.mxu0 %v93_v22  ;;  %v79_v24 = vpop.permute.xlu0 %78  ;;  %v58_v29 = vmul.f32 %v319_v15, %v35_v25 }
  0x87   :  { %v88_v26 = vadd.f32 %v79_v24, %v60_v23 }
  0x89   :  { %v92_v28 = vmax.f32 %v88_v26, 0.0  ;;  %v69_v31 = vpop.permute.xlu1 %68 }
  0x8a   :  { %v74_v30 = vpop.permute.xlu0 %73  ;;  %v86_v33 = vadd.f32 %v69_v31, %v58_v29 }
  0x8b   :  { %v87_v32 = vadd.f32 %v74_v30, %v59_v27  ;;  %340 = vmatprep.subr.mxu0 %v92_v28 }
  0x8c   :  { %341 = vmatpush3.msra.mxu0 %v92_v28  ;;  %v90_v35 = vmax.f32 %v86_v33, 0.0 }
  0x8d   :  { %v91_v34 = vmax.f32 %v87_v32, 0.0  ;;  %v115_v42 = vpop.permute.xlu1 %114 }
  0x8e   :  { %v120_v40 = vpop.permute.xlu0 %119 }
  0x8f   :  { %342 = vmatprep.subr.mxu0 %v91_v34 }
  0x90   :  { %343 = vmatpush3.msra.mxu0 %v91_v34 }
  0x91   :  { %344 = vmatprep.subr.mxu0 %v90_v35  ;;  %v105_v51 = vpop.permute.xlu1 %104 }
  0x92   :  { %345 = vmatpush3.msra.mxu0 %v90_v35  ;;  %v110_v46 = vpop.permute.xlu0 %109 }
  0x93   :  { %347 = vmatmul.mubr.msk.f32.vlgmr.msra.gmra.mxu0 %vm122_vm0, %v95_v36 }
  0x94   :  { %349 = vmatprep.mubr.msk.f32.mxu0 %vm122_vm0, %v96_v37 }
  0x96   :  { %v229_v57 = vpop.permute.xlu0 %228 }
  0x97   :  { %350 = vmatmul.mubr.msk.f32.gmra.mxu0 %vm122_vm0, %v97_v38 }
 0x153   :  { %v348_v41 = vpop.f32.mrf.mxu0 }
 0x154   :  { %v207_v48 = vadd.f32 %v348_v41, %v110_v46 }
 0x155   :  { %v201_v43 = vpop.f32.mrf.mxu0 }
 0x156   :  { %v202_v52 = vadd.f32 %v201_v43, %v105_v51  ;;  %v221_v54 = vmax.f32 %v207_v48, 0.0 }
 0x157   :  { %v351_v44 = vpop.f32.mrf.mxu0 }
 0x158   :  { %v217_v45 = vadd.f32 %v351_v44, %v120_v40  ;;  %v220_v55 = vmax.f32 %v202_v52, 0.0 }
 0x159   :  { %v211_v47 = vpop.f32.mrf.mxu0 }
 0x15a   :  { %v223_v49 = vmax.f32 %v217_v45, 0.0  ;;  %v212_v50 = vadd.f32 %v211_v47, %v115_v42 }
 0x15c   :  { %v222_v53 = vmax.f32 %v212_v50, 0.0  ;;  %353 = vmatpush3.msra.mxu1 %v223_v49 }
 0x15d   :  { %354 = vmatprep.subr.mxu1 %v392_v39 }
 0x15e   :  { %355 = vmatpush3.msra.mxu1 %v222_v53 }
 0x15f   :  { %356 = vmatprep.subr.mxu1 %v392_v39 }
 0x160   :  { %357 = vmatpush3.msra.mxu1 %v221_v54 }
 0x161   :  { %358 = vmatprep.subr.mxu1 %v392_v39 }
 0x162   :  { %359 = vmatpush3.msra.mxu1 %v220_v55 }
 0x163   :  { %361 = vmatmul.mubr.msk.f32.vlgmr.msra.gmra.mxu1 %vm122_vm0, %v224_v56 }
 0x223   :  { %v300_v58 = vpop.f32.mrf.mxu1 }
 0x224   :  { %v301_v59 = vadd.f32 %v300_v58, %v229_v57 }
 0x225   :  { %v362_v60 = vpop.f32.mrf.mxu1 }
 0x226   :  { %304 = vst [vmem:[#allocation2] sm:$0x3] %v301_v59 }
 0x227   :  { %380 = shalt.err (!%p377_p4)
}
 0x228   :  { %314 = dma.vmem_to_hbm [thread:$0]  %s312_s11, 32, %s507_s7, [#allocation3]  }
 0x229   :  { %389 = dma.done.wait [#allocation3], 32  }
 0x22a   :  { %390 = vsyncadd [#allocation3], 4294967264 }
 0x22b   :  { %318 = vsyncpa [#allocation3], 1 }

</bundles_post_ra>
